<compile_context>
chip_gen: v7x
topology: tpu7x:2x2x1
jax: 0.10.0
libtpu: 0.0.40
codegen_flags: <defaults>
</compile_context>

<pallas_src>
import jax
import jax.numpy as jnp
import numpy as np
from jax.experimental import pallas as pl
from jax.experimental.pallas import tpu as pltpu

_LANE = 128
_MIN_SPLIT_BYTES = 1 << 20      # only split a single-block grid if >= 1 MiB of data


def _chip_params():
    """(per-pipeline-stage VMEM budget, vmem_limit_bytes) per TPU generation.

    One stage = image-in tile + image-out tile + padded constant blocks; total
    VMEM use is ~2x the stage budget (double-buffered pipeline)."""
    kind = ""
    try:
        kind = jax.devices()[0].device_kind.lower()
    except Exception:
        pass
    if "v7" in kind:      # v7x: 3.2 TB/s HBM but only 64 MiB physical VMEM
        return 13 << 20, 32 << 20
    if "v6" in kind:      # v6e: 1.4 TB/s HBM, 128 MiB VMEM
        return 18 << 20, 64 << 20
    if "v5" in kind:      # v5e: ~0.8 TB/s HBM; bigger tiles buy nothing
        return 9 << 20, 32 << 20
    return 8 << 20, 32 << 20          # unknown chip: conservative


def _round_up(x, m):
    return ((x + m - 1) // m) * m


def _pick_tiles(num_rows, row_len, itemsize, const_mode, stage_bytes):
    """Choose (row_tile, lane_tile) so one pipeline stage fits `stage_bytes`."""
    sub = 8 * max(1, 4 // itemsize)          # sublane multiple: 8 f32, 16 bf16, 32 int8
    row_img_bytes = 2 * row_len * itemsize   # in + out, per row
    if const_mode == "per_row":
        # two (tr, 1) f32 columns each pad to tr x 128 lanes in VMEM
        per_row_cost = row_img_bytes + 2 * _LANE * 4
        fixed_cost = 0
    else:  # "per_lane": two (1, L) f32 rows shared by every row block
        per_row_cost = row_img_bytes
        fixed_cost = 2 * max(row_len, _LANE) * 4

    budget = stage_bytes - fixed_cost
    max_rows = budget // per_row_cost if budget > 0 else 0

    if num_rows <= max_rows:
        tr, tl = num_rows, row_len
        # Split the row axis in two when it is big enough: keeps both v7x
        # TensorCores (sharded via "parallel") and their DMA queues busy.
        if num_rows >= 2 * sub and num_rows * row_len * itemsize >= _MIN_SPLIT_BYTES:
            tr = _round_up((num_rows + 1) // 2, sub)
    elif max_rows >= sub:
        tr, tl = (max_rows // sub) * sub, row_len          # full rows, several blocks
    else:
        # Even a sublane group of full rows blows the budget: tile the lane axis.
        tr = num_rows if num_rows < sub else sub
        if const_mode == "per_row":
            fixed2 = 2 * tr * _LANE * 4
            per_lane_cost = tr * 2 * itemsize
        else:
            fixed2 = 0
            per_lane_cost = tr * 2 * itemsize + 2 * 4
        lane_budget = max((stage_bytes - fixed2) // per_lane_cost, _LANE)
        tl = max(_LANE, min(row_len, (lane_budget // _LANE) * _LANE))

    # If the grid collapsed to a single block but the data is big enough to
    # matter, split the lane axis so a 2-TC chip gets two blocks.
    if (pl.cdiv(num_rows, tr) * pl.cdiv(row_len, tl) == 1
            and row_len >= 2 * _LANE
            and num_rows * row_len * itemsize >= _MIN_SPLIT_BYTES):
        tl = _round_up((row_len + 1) // 2, _LANE)

    return tr, tl


def _normalize_kernel(x_ref, scale_ref, bias_ref, o_ref):
    # (x - mean) / std  ==  x * (1/std) + (-mean/std); math kept in f32.
    x = x_ref[...].astype(jnp.float32)
    o_ref[...] = (x * scale_ref[...] + bias_ref[...]).astype(o_ref.dtype)


def normalization(img, mean, std):
    """Pallas equivalent of Normalization.forward for NCHW `img`, (C,) mean/std."""
    N, C, H, W = img.shape
    HW = H * W
    itemsize = jnp.dtype(img.dtype).itemsize

    # Per-channel scale/bias precomputed once, in f32 (kept f32 for bf16 inputs).
    mean32 = jnp.asarray(mean, jnp.float32).reshape(-1)
    std32 = jnp.asarray(std, jnp.float32).reshape(-1)
    scale_c = 1.0 / std32
    bias_c = -mean32 * scale_c

    # Layout selection for a lane-dense output:
    #   A) (N*C, H*W) rows with per-row (R,1) constant columns   (H*W % 128 == 0)
    #   B) (N, C*H*W) rows with lane-expanded (1,L) constants    (C*H*W % 128 == 0)
    if HW % _LANE == 0 or (C * HW) % _LANE != 0:
        const_mode = "per_row"
        R, L = N * C, HW
        x2 = img.reshape(R, L)
        scale_arr = jnp.broadcast_to(scale_c[None, :], (N, C)).reshape(R, 1)
        bias_arr = jnp.broadcast_to(bias_c[None, :], (N, C)).reshape(R, 1)
        # TODO(synk): when neither H*W nor C*H*W is a multiple of 128 the output
        # lane extent stays ragged (masked vst) — correct but not lane-dense.
    else:
        const_mode = "per_lane"
        R, L = N, C * HW
        x2 = img.reshape(R, L)
        scale_arr = jnp.repeat(scale_c, HW).reshape(1, L)
        bias_arr = jnp.repeat(bias_c, HW).reshape(1, L)

    stage_bytes, vmem_limit = _chip_params()
    tr, tl = _pick_tiles(R, L, itemsize, const_mode, stage_bytes)
    grid = (pl.cdiv(R, tr), pl.cdiv(L, tl))

    if const_mode == "per_row":
        const_spec = pl.BlockSpec((tr, 1), lambda i, j: (i, 0))
    else:
        const_spec = pl.BlockSpec((1, tl), lambda i, j: (0, j))

    grid_spec = pltpu.PrefetchScalarGridSpec(
        num_scalar_prefetch=0,
        grid=grid,
        in_specs=[
            pl.BlockSpec((tr, tl), lambda i, j: (i, j)),   # image tile
            const_spec,                                    # per-channel scale (1/std)
            const_spec,                                    # per-channel bias (-mean/std)
        ],
        out_specs=pl.BlockSpec((tr, tl), lambda i, j: (i, j)),
    )

    out2 = pl.pallas_call(
        _normalize_kernel,
        out_shape=jax.ShapeDtypeStruct((R, L), img.dtype),
        grid_spec=grid_spec,
        compiler_params=pltpu.CompilerParams(
            dimension_semantics=("parallel", "parallel"),
            vmem_limit_bytes=vmem_limit,
        ),
    )(x2, scale_arr, bias_arr)

    return out2.reshape(N, C, H, W)


def _check(img, mean, std, rtol=1e-5, atol=5e-6):
    out = jax.block_until_ready(normalization(img, mean, std))
    ref = (img - mean[None, :, None, None]) / std[None, :, None, None]
    np.testing.assert_allclose(np.asarray(out), np.asarray(ref), rtol=rtol, atol=atol)
    return out


if __name__ == "__main__":
    key = jax.random.PRNGKey(0)
    k0, k1, k2 = jax.random.split(key, 3)

    # Primary shape (same role as the module's mean/std parameters).
    mean3 = jnp.array([0.485, 0.456, 0.406], dtype=jnp.float32)
    std3 = jnp.array([0.229, 0.224, 0.225], dtype=jnp.float32)
    img = jax.random.uniform(k0, (2, 3, 16, 16), dtype=jnp.float32)
    _check(img, mean3, std3)                       # layout A (H*W % 128 == 0)

    # Extra tiny shapes exercising the other layout paths.
    mean4 = jnp.array([0.5, 0.4, 0.3, 0.2], dtype=jnp.float32)
    std4 = jnp.array([0.2, 0.25, 0.3, 0.35], dtype=jnp.float32)
    _check(jax.random.uniform(k1, (2, 4, 8, 8), dtype=jnp.float32), mean4, std4)   # layout B
    _check(jax.random.uniform(k2, (2, 3, 7, 7), dtype=jnp.float32), mean3, std3)   # ragged fallback

    print("KERNEL_OK")
</pallas_src>

<mosaic_0001>
module attributes {stable_mosaic.version = 11 : i64} {
  func.func @_normalize_kernel(%arg0: i32, %arg1: i32, %arg2: memref<6x256xf32, #tpu.memory_space<vmem>>, %arg3: memref<6x1xf32, #tpu.memory_space<vmem>>, %arg4: memref<6x1xf32, #tpu.memory_space<vmem>>, %arg5: memref<6x256xf32, #tpu.memory_space<vmem>>) attributes {dimension_semantics = [#tpu.dimension_semantics<parallel>, #tpu.dimension_semantics<parallel>], iteration_bounds = array<i64: 1, 1>, scalar_prefetch = 0 : i64, scratch_operands = 0 : i64, tpu.core_type = #tpu.core_type<tc>, window_params = [{transform_indices = @transform_0, window_bounds = array<i64: 6, 256>}, {transform_indices = @transform_1, window_bounds = array<i64: 6, 1>}, {transform_indices = @transform_2, window_bounds = array<i64: 6, 1>}, {transform_indices = @transform_3, window_bounds = array<i64: 6, 256>}]} {
    %c0 = arith.constant 0 : index
    %c0_0 = arith.constant 0 : index
    %0 = vector.load %arg2[%c0, %c0_0] : memref<6x256xf32, #tpu.memory_space<vmem>>, vector<6x256xf32>
    %c0_1 = arith.constant 0 : index
    %c0_2 = arith.constant 0 : index
    %1 = vector.load %arg3[%c0_1, %c0_2] : memref<6x1xf32, #tpu.memory_space<vmem>>, vector<6x1xf32>
    %2 = vector.broadcast %1 : vector<6x1xf32> to vector<6x256xf32>
    %3 = arith.mulf %0, %2 : vector<6x256xf32>
    %c0_3 = arith.constant 0 : index
    %c0_4 = arith.constant 0 : index
    %4 = vector.load %arg4[%c0_3, %c0_4] : memref<6x1xf32, #tpu.memory_space<vmem>>, vector<6x1xf32>
    %5 = vector.broadcast %4 : vector<6x1xf32> to vector<6x256xf32>
    %6 = arith.addf %3, %5 : vector<6x256xf32>
    %c0_5 = arith.constant 0 : index
    %c0_6 = arith.constant 0 : index
    %7 = vector.load %arg5[%c0_5, %c0_6] : memref<6x256xf32, #tpu.memory_space<vmem>>, vector<6x256xf32>
    tpu.vector_store %arg5[%c0_5, %c0_6], %6 {strides = array<i32>} : memref<6x256xf32, #tpu.memory_space<vmem>>, vector<6x256xf32>,
    return
  }
  func.func @transform_0(%arg0: i32, %arg1: i32) -> (i32, i32) {
    %c0_i32 = arith.constant 0 : i32
    return %arg0, %arg1 : i32, i32
  }
  func.func @transform_1(%arg0: i32, %arg1: i32) -> (i32, i32) {
    %c0_i32 = arith.constant 0 : i32
    %c0_i32_0 = arith.constant 0 : i32
    return %arg0, %c0_i32 : i32, i32
  }
  func.func @transform_2(%arg0: i32, %arg1: i32) -> (i32, i32) {
    %c0_i32 = arith.constant 0 : i32
    %c0_i32_0 = arith.constant 0 : i32
    return %arg0, %c0_i32 : i32, i32
  }
  func.func @transform_3(%arg0: i32, %arg1: i32) -> (i32, i32) {
    %c0_i32 = arith.constant 0 : i32
    return %arg0, %arg1 : i32, i32
  }
}

</mosaic_0001>

<bundles_post_ra>
// kernel: tpu_custom_call.1
= control target key start
LH: loop header
LB: loop body
LE: loop exit
PB: predicated region body
PF: predicated region fallthrough
CT: control target
= control target key end

     0   :  { %v76_v1 = vmov 0   ;;  %s122_s0 = inlined_call_operand.vmem [shape: f32[6,256], index: 0, kind: input, shape index: {}]   ;;  %s123_s1 = inlined_call_operand.vmem [shape: f32[6,1], index: 1, kind: input, shape index: {}]   ;;  %s124_s2 = inlined_call_operand.vmem [shape: f32[6,1], index: 2, kind: input, shape index: {}]   ;;  %s125_s3 = inlined_call_operand.hbm [shape: f32[6,256], index: 3, kind: output, shape index: {}]  }
   0x1   :  { %v17_v0 = vld [vmem:[%s123_s1] sm:$0x3f]  ;;  %51 = vset.pattern.permute.xlu0 %v76_v1 }
   0x2   :  { %8 = vsyncpa [#allocation3], 0  ;;  %20 = vperm.xlu0 %51, %v17_v0   ;;  %v25_v2 = vld [vmem:[%s124_s2] sm:$0x3f]  ;;  %v16_v5 = vld [vmem:[%s122_s0 + $0x8] sm:$0x3f] }
   0x3   :  { %v15_v4 = vld [vmem:[%s122_s0] sm:$0x3f]  ;;  %s77_s20 = smov [#allocation2]  }
   0x4   :  { %s41_s1 = sshll.u32 %s77_s20, 4  ;;  %s42_s1 = int_to_ptr.vmem [resolvable:$true] %s41_s1 }
   0x5   :  { %s52_s2 = scalar_lea.vmem %s42_s1, 256  ;;  %p57_p1 = scmp.lt.s32.totalorder %s42_s1, %s42_s1 }
   0x6   :  { %28 = vperm.xlu0 %51, %v25_v2   ;;  %p53_p0 = scmp.ne.s32.totalorder %s42_s1, %s52_s2  ;;  %p58_p2 = scmp.lt.s32.totalorder %s52_s2, %s52_s2 }
   0x8   :  { %p59_p3 = por %p58_p2, %p57_p1 }
   0xa   :  { %p60_p4 = pnand %p59_p3, %p53_p0 }
  0x81   :  { %v21_v3 = vpop.permute.xlu0 %20 }
  0x82   :  { %v23_v6 = vmul.f32 %v21_v3, %v15_v4  ;;  %v24_v7 = vmul.f32 %v21_v3, %v16_v5 }
  0x85   :  { %v29_v8 = vpop.permute.xlu0 %28 }
  0x86   :  { %v31_v9 = vadd.f32 %v29_v8, %v23_v6  ;;  %v32_v10 = vadd.f32 %v29_v8, %v24_v7 }
  0x88   :  { %33 = vst [vmem:[#allocation2] sm:$0x3f] %v31_v9  ;;  %34 = vst [vmem:[#allocation2 + $0x8] sm:$0x3f] %v32_v10 }
  0x89   :  { %63 = shalt.err (!%p60_p4)
}
  0x8a   :  { %s64_s0 = scalar_lea.hbm %s125_s3, 256 }
  0x8b   :  { %p65_p5 = scmp.ne.s32.totalorder %s125_s3, %s64_s0  ;;  %p68_p6 = scmp.lt.u32.totalorder %s64_s0, %s125_s3 }
  0x8d   :  { %p70_p7 = pnand %p68_p6, %p65_p5 }
  0x8f   :  { %73 = shalt.err (!%p70_p7)
}
  0x90   :  { %44 = dma.vmem_to_hbm [thread:$0]  %s42_s1, 256, %s125_s3, [#allocation3]  }
  0x91   :  { %74 = dma.done.wait [#allocation3], 256  }
  0x92   :  { %75 = vsyncadd [#allocation3], 4294967040 }
  0x93   :  { %48 = vsyncpa [#allocation3], 1 }

</bundles_post_ra>
